<compile_context>
chip_gen: v7x
topology: tpu7x:2x2x1
jax: 0.10.0
libtpu: 0.0.40
codegen_flags: <defaults>
</compile_context>

<pallas_src>
import jax
import jax.numpy as jnp
from jax.experimental import pallas as pl
from jax.experimental.pallas import tpu as pltpu


def _mish_kernel(x_ref, o_ref):
    x = x_ref[...].astype(jnp.float32)
    # tanh(softplus(x)) = (e^x (e^x + 2)) / (e^x (e^x + 2) + 2)
    # With t = exp(-|x|) (always in (0, 1], no overflow):
    #   x >= 0:  (1 + 2t) / (1 + 2t + 2t^2)
    #   x <  0:  (t^2 + 2t) / (t^2 + 2t + 2)
    t = jnp.exp(-jnp.abs(x))
    pos = x >= 0.0
    num = jnp.where(pos, 1.0 + 2.0 * t, t * t + 2.0 * t)
    den = num + jnp.where(pos, 2.0 * t * t, 2.0)
    o_ref[...] = (x * (num / den)).astype(o_ref.dtype)


def mish(x, *, tile_rows=2048):
    """Mish activation. Accepts any shape (e.g. NCHW); elementwise."""
    orig_shape = x.shape
    orig_dtype = x.dtype
    n = x.size
    if n == 0:
        return x

    LANES = 128
    itemsize = jnp.dtype(orig_dtype).itemsize
    # dtype-aware sublane quantum: 8 rows for 4-byte, 16 for 2-byte, 32 for 1-byte
    sub = max(8, 32 // max(itemsize, 1))

    flat = jnp.ravel(x)
    padded = (n % LANES) != 0
    if padded:
        # ragged fallback: pad only up to a multiple of 128 lanes
        n_pad = pl.cdiv(n, LANES) * LANES
        flat = jnp.concatenate([flat, jnp.zeros((n_pad - n,), dtype=orig_dtype)])
    else:
        n_pad = n
    rows = n_pad // LANES
    x2d = flat.reshape(rows, LANES)

    # Row tile: multiple of the dtype sublane quantum, ~1 MiB per f32 block,
    # clamped so we never allocate a block far larger than the array.
    tr = min(int(tile_rows), pl.cdiv(rows, sub) * sub)
    tr = max(sub, (tr // sub) * sub)

    grid = (pl.cdiv(rows, tr),)  # partial last block handled by Pallas masking

    out2d = pl.pallas_call(
        _mish_kernel,
        out_shape=jax.ShapeDtypeStruct((rows, LANES), orig_dtype),
        grid_spec=pltpu.PrefetchScalarGridSpec(
            num_scalar_prefetch=0,
            grid=grid,
            in_specs=[pl.BlockSpec((tr, LANES), lambda i: (i, 0))],
            out_specs=pl.BlockSpec((tr, LANES), lambda i: (i, 0)),
        ),
        compiler_params=pltpu.CompilerParams(
            dimension_semantics=("parallel",),  # lets v7x shard the loop over 2 TCs
        ),
    )(x2d)

    if padded:
        return out2d.reshape(-1)[:n].reshape(orig_shape)
    return out2d.reshape(orig_shape)


def _mish_ref(x):
    # Reference: x * tanh(softplus(x)) in f32 (matches the PyTorch module).
    xf = x.astype(jnp.float32)
    return (xf * jnp.tanh(jax.nn.softplus(xf))).astype(x.dtype)


if __name__ == "__main__":
    key = jax.random.PRNGKey(0)

    # Main case: small NCHW activation (fast, copy-free path).
    x = jax.random.normal(key, (2, 4, 16, 16), dtype=jnp.float32)
    y = jax.block_until_ready(mish(x))
    y_ref = _mish_ref(x)
    assert y.shape == x.shape and y.dtype == x.dtype
    assert jnp.allclose(y, y_ref, atol=1e-5, rtol=1e-5)

    # Ragged case (exercises the pad + partial-block path).
    k1, k2 = jax.random.split(key)
    xr = jax.random.normal(k1, (3, 5, 7), dtype=jnp.float32) * 4.0
    yr = jax.block_until_ready(mish(xr))
    assert jnp.allclose(yr, _mish_ref(xr), atol=1e-5, rtol=1e-5)

    # bfloat16 case (dtype-aware sublane quantum; HBM traffic stays bf16).
    xb = jax.random.normal(k2, (2, 4, 16, 16), dtype=jnp.bfloat16)
    yb = jax.block_until_ready(mish(xb))
    assert yb.dtype == jnp.bfloat16
    assert jnp.allclose(yb.astype(jnp.float32),
                        _mish_ref(xb).astype(jnp.float32),
                        atol=2e-2, rtol=2e-2)

    print("KERNEL_OK")
</pallas_src>

<mosaic_0001>
module attributes {stable_mosaic.version = 11 : i64} {
  func.func @_mish_kernel(%arg0: i32, %arg1: memref<16x128xf32, #tpu.memory_space<vmem>>, %arg2: memref<16x128xf32, #tpu.memory_space<vmem>>) attributes {dimension_semantics = [#tpu.dimension_semantics<parallel>], iteration_bounds = array<i64: 1>, scalar_prefetch = 0 : i64, scratch_operands = 0 : i64, tpu.core_type = #tpu.core_type<tc>, window_params = [{transform_indices = @transform_0, window_bounds = array<i64: 16, 128>}, {transform_indices = @transform_1, window_bounds = array<i64: 16, 128>}]} {
    %c0 = arith.constant 0 : index
    %c0_0 = arith.constant 0 : index
    %0 = vector.load %arg1[%c0, %c0_0] : memref<16x128xf32, #tpu.memory_space<vmem>>, vector<16x128xf32>
    %1 = math.absf %0 : vector<16x128xf32>
    %cst = arith.constant 0.000000e+00 : f32
    %2 = vector.broadcast %cst : f32 to vector<16x128xf32>
    %3 = arith.subf %2, %1 : vector<16x128xf32>
    %4 = math.exp %3 : vector<16x128xf32>
    %cst_1 = arith.constant 0.000000e+00 : f32
    %5 = vector.broadcast %cst_1 : f32 to vector<16x128xf32>
    %6 = arith.cmpf oge, %0, %5 : vector<16x128xf32>
    %cst_2 = arith.constant 2.000000e+00 : f32
    %7 = vector.broadcast %cst_2 : f32 to vector<16x128xf32>
    %8 = arith.mulf %7, %4 : vector<16x128xf32>
    %cst_3 = arith.constant 1.000000e+00 : f32
    %9 = vector.broadcast %cst_3 : f32 to vector<16x128xf32>
    %10 = arith.addf %9, %8 : vector<16x128xf32>
    %11 = arith.mulf %4, %4 : vector<16x128xf32>
    %cst_4 = arith.constant 2.000000e+00 : f32
    %12 = vector.broadcast %cst_4 : f32 to vector<16x128xf32>
    %13 = arith.mulf %12, %4 : vector<16x128xf32>
    %14 = arith.addf %11, %13 : vector<16x128xf32>
    %15 = arith.select %6, %10, %14 : vector<16x128xi1>, vector<16x128xf32>
    %cst_5 = arith.constant 2.000000e+00 : f32
    %16 = vector.broadcast %cst_5 : f32 to vector<16x128xf32>
    %17 = arith.mulf %16, %4 : vector<16x128xf32>
    %18 = arith.mulf %17, %4 : vector<16x128xf32>
    %cst_6 = arith.constant 2.000000e+00 : f32
    %19 = vector.broadcast %cst_6 : f32 to vector<16x128xf32>
    %20 = arith.select %6, %18, %19 : vector<16x128xi1>, vector<16x128xf32>
    %21 = arith.addf %15, %20 : vector<16x128xf32>
    %22 = arith.divf %15, %21 : vector<16x128xf32>
    %23 = arith.mulf %0, %22 : vector<16x128xf32>
    %c0_7 = arith.constant 0 : index
    %c0_8 = arith.constant 0 : index
    %24 = vector.load %arg2[%c0_7, %c0_8] : memref<16x128xf32, #tpu.memory_space<vmem>>, vector<16x128xf32>
    tpu.vector_store %arg2[%c0_7, %c0_8], %23 {strides = array<i32>} : memref<16x128xf32, #tpu.memory_space<vmem>>, vector<16x128xf32>,
    return
  }
  func.func @transform_0(%arg0: i32) -> (i32, i32) {
    %c0_i32 = arith.constant 0 : i32
    %c0_i32_0 = arith.constant 0 : i32
    return %arg0, %c0_i32 : i32, i32
  }
  func.func @transform_1(%arg0: i32) -> (i32, i32) {
    %c0_i32 = arith.constant 0 : i32
    %c0_i32_0 = arith.constant 0 : i32
    return %arg0, %c0_i32 : i32, i32
  }
}

</mosaic_0001>

<bundles_post_ra>
// kernel: tpu_custom_call.1
= control target key start
LH: loop header
LB: loop body
LE: loop exit
PB: predicated region body
PF: predicated region fallthrough
CT: control target
= control target key end

     0   :  { %6 = vsyncpa [#allocation3], 0  ;;  %s180_s0 = inlined_call_operand.hbm [shape: f32[16,128], index: 0, kind: input, shape index: {}]   ;;  %s181_s1 = inlined_call_operand.hbm [shape: f32[16,128], index: 1, kind: output, shape index: {}]  }
   0x1   :  { %7 = vsyncpa [#allocation4], 0  ;;  %s136_s6 = smov [#allocation2]   ;;  %s88_s10 = scalar_lea.hbm %s180_s0, 256 }
   0x2   :  { %s13_s7 = sshll.u32 %s136_s6, 4  ;;  %p89_p0 = scmp.ne.s32.totalorder %s180_s0, %s88_s10  ;;  %s14_s7 = int_to_ptr.vmem [resolvable:$true] %s13_s7 }
   0x3   :  { %p92_p1 = scmp.lt.u32.totalorder %s88_s10, %s180_s0 }
   0x5   :  { %p94_p2 = pnand %p92_p1, %p89_p0 }
   0x7   :  { %97 = shalt.err (!%p94_p2)
}
   0x8   :  { %s98_s15 = scalar_lea.vmem %s14_s7, 256  ;;  %p103_p4 = scmp.lt.s32.totalorder %s14_s7, %s14_s7 }
   0x9   :  { %p99_p3 = scmp.ne.s32.totalorder %s14_s7, %s98_s15  ;;  %p104_p5 = scmp.lt.s32.totalorder %s98_s15, %s98_s15 }
   0xb   :  { %p105_p6 = por %p104_p5, %p103_p4 }
   0xd   :  { %p106_p7 = pnand %p105_p6, %p99_p3 }
   0xf   :  { %109 = shalt.err (!%p106_p7)
}
  0x10   :  { %s137_s16 = smov 128   ;;  %s138_s17 = smov 8  }
  0x11   :  { %19 = dma.hbm_to_vmem [thread:$0]  %s180_s0, 256, %s14_s7, [#allocation3], %s137_s16, %s137_s16, %s138_s17  }
  0x12   :  { %132 = dma.done.wait [#allocation3], 256  }
  0x13   :  { %133 = vsyncadd [#allocation3], 4294967040  ;;  %v23_v0 = vld [vmem:[#allocation2] sm:$0xff]  ;;  %v24_v1 = vld [vmem:[#allocation2 + $0x8] sm:$0xff]  ;;  %s139_s0 = smov [#allocation5]  }
  0x14   :  { %v25_v2 = vand.u32 2147483647, %v23_v0  ;;  %v26_v3 = vand.u32 2147483647, %v24_v1  ;;  %vm33_vm0 = vcmp.ge.f32.partialorder %v23_v0, 0.0  ;;  %vm34_vm1 = vcmp.ge.f32.partialorder %v24_v1, 0.0 }
  0x15   :  { %s64_s20 = sshll.u32 %s139_s0, 4  ;;  %s65_s20 = int_to_ptr.vmem [resolvable:$true] %s64_s20 }
  0x16   :  { %v27_v4 = vsub.f32 0.0, %v25_v2  ;;  %v28_v5 = vsub.f32 0.0, %v26_v3  ;;  %s110_s21 = scalar_lea.vmem %s65_s20, 256  ;;  %p115_p9 = scmp.lt.s32.totalorder %s65_s20, %s65_s20 }
  0x17   :  { %p111_p8 = scmp.ne.s32.totalorder %s65_s20, %s110_s21  ;;  %p116_p10 = scmp.lt.s32.totalorder %s110_s21, %s110_s21 }
  0x18   :  { %v29_v6 = vmul.f32 1.442695, %v27_v4  ;;  %v31_v7 = vmul.f32 1.442695, %v28_v5 }
  0x19   :  { %p117_p11 = por %p116_p10, %p115_p9 }
  0x1a   :  { %80 = vpow2.f32 %v29_v6 }
  0x1b   :  { %82 = vpow2.f32 %v31_v7  ;;  %p118_p12 = pnand %p117_p11, %p111_p8 }
  0x24   :  { %v81_v8 = vpop.eup %80 }
  0x25   :  { %v83_v9 = vpop.eup %82  ;;  %v35_v10 = vmul.f32 2.0, %v81_v8  ;;  %v39_v11 = vmul.f32 %v81_v8, %v81_v8 }
  0x26   :  { %v36_v12 = vmul.f32 2.0, %v83_v9  ;;  %v40_v13 = vmul.f32 %v83_v9, %v83_v9 }
  0x27   :  { %v37_v14 = vadd.f32 1.0, %v35_v10  ;;  %v41_v15 = vadd.f32 %v39_v11, %v35_v10  ;;  %v45_v16 = vmul.f32 %v81_v8, %v35_v10 }
  0x28   :  { %v38_v17 = vadd.f32 1.0, %v36_v12  ;;  %v42_v18 = vadd.f32 %v40_v13, %v36_v12  ;;  %v46_v19 = vmul.f32 %v83_v9, %v36_v12 }
  0x29   :  { %v43_v20 = vsel %vm33_vm0, %v37_v14, %v41_v15  ;;  %v47_v21 = vsel %vm33_vm0, %v45_v16, 2.0 }
  0x2a   :  { %v49_v22 = vadd.f32 %v47_v21, %v43_v20  ;;  %v44_v23 = vsel %vm34_vm1, %v38_v17, %v42_v18  ;;  %v48_v24 = vsel %vm34_vm1, %v46_v19, 2.0 }
  0x2b   :  { %v50_v25 = vadd.f32 %v48_v24, %v44_v23 }
  0x2c   :  { %84 = vrcp.f32 %v49_v22 }
  0x2d   :  { %86 = vrcp.f32 %v50_v25 }
  0x36   :  { %v85_v26 = vpop.eup %84 }
  0x37   :  { %v87_v27 = vpop.eup %86  ;;  %v52_v28 = vmul.f32 %v85_v26, %v43_v20 }
  0x38   :  { %v54_v29 = vmul.f32 %v87_v27, %v44_v23 }
  0x39   :  { %v55_v30 = vmul.f32 %v52_v28, %v23_v0 }
  0x3a   :  { %v56_v31 = vmul.f32 %v54_v29, %v24_v1 }
  0x3b   :  { %57 = vst [vmem:[#allocation5] sm:$0xff] %v55_v30 }
  0x3c   :  { %58 = vst [vmem:[#allocation5 + $0x8] sm:$0xff] %v56_v31 }
  0x3d   :  { %121 = shalt.err (!%p118_p12)
}
  0x3e   :  { %s122_s24 = scalar_lea.hbm %s181_s1, 256 }
  0x3f   :  { %p123_p13 = scmp.ne.s32.totalorder %s181_s1, %s122_s24  ;;  %p126_p0 = scmp.lt.u32.totalorder %s122_s24, %s181_s1 }
  0x41   :  { %p128_p1 = pnand %p126_p0, %p123_p13 }
  0x43   :  { %131 = shalt.err (!%p128_p1)
}
  0x44   :  { %70 = dma.vmem_to_hbm [thread:$0]  %s65_s20, 256, %s181_s1, [#allocation4], %s137_s16, %s137_s16, %s138_s17  }
  0x45   :  { %134 = dma.done.wait [#allocation4], 256  }
  0x46   :  { %135 = vsyncadd [#allocation4], 4294967040 }
  0x47   :  { %74 = vsyncpa [#allocation3], 1 }
  0x48   :  { %75 = vsyncpa [#allocation4], 1 }

</bundles_post_ra>
